<compile_context>
chip_gen: v7x
topology: tpu7x:2x2x1
jax: 0.10.0
libtpu: 0.0.40
codegen_flags: <defaults>
</compile_context>

<pallas_src>
import functools
from dataclasses import dataclass

import numpy as np
import jax
import jax.numpy as jnp
from jax import lax
from jax.experimental import pallas as pl
from jax.experimental.pallas import tpu as pltpu


_OUT_LANES = 128  # width of the packed scalar-output row (lane-dense, unmasked store)


@dataclass(frozen=True)
class C2FTCNConfig:
    num_samples_frames: int = 5
    epsilon_l: float = 0.02
    epsilon: float = 0.10
    delta: float = 0.05
    high_level_act_loss: bool = False  # activity_labels is None in this synthetic setup


# -------------------------------------------------------------------------------------
# Fused kernel: CrossEntropy(ignore_index=-100) + transition MSE + feature contrastive
# -------------------------------------------------------------------------------------
def _fused_kernel(pred_ref, labels_ref, count_ref, f1_ref, meta_ref, out_ref,
                  *, B, C, T, N, mse_weight, delta, temp):
    BT = B * T

    # ---------------- CE + transition MSE on the lane-dense (C, B*T) slab -------------
    logits = pred_ref[...].astype(jnp.float32)             # bf16 over the wire, f32 math
    labels = labels_ref[...]                                # (1, BT) int32

    # log-softmax over classes = cheap sublane (axis 0) reduction over C rows
    m = jnp.max(logits, axis=0, keepdims=True)
    z = logits - m
    lse = jnp.log(jnp.sum(jnp.exp(z), axis=0, keepdims=True))
    logsm = z - lse                                         # (C, BT)

    # CrossEntropyLoss(pred, labels), ignore_index=-100, mean over valid positions.
    valid = labels != -100
    safe_lbl = jnp.where(valid, labels, 0)
    cls = lax.broadcasted_iota(jnp.int32, (C, BT), 0)
    onehot = (cls == safe_lbl).astype(jnp.float32)
    nll = -jnp.sum(onehot * logsm, axis=0, keepdims=True)           # (1, BT)
    validf = valid.astype(jnp.float32)
    # NB: clamped denominator; torch returns NaN when *all* labels are ignored.
    n_valid = jnp.maximum(jnp.sum(validf, keepdims=True), 1.0)      # (1, 1)
    ce = jnp.sum(nll * validf, keepdims=True) / n_valid             # (1, 1)

    # Frame mask for the transition MSE: lane p = j*T + t is valid iff 1 <= t < count[j].
    # (t >= 1 also removes the spurious cross-video boundary diffs of the flat layout.)
    pos = lax.broadcasted_iota(jnp.int32, (1, BT), 1)
    fmask_b = pos < 0                                               # all-False init
    for j in range(B):                                              # B is tiny & static
        lo = j * T + 1
        hi = j * T + count_ref[j]                                   # scalar read from SMEM
        fmask_b = fmask_b | ((pos >= lo) & (pos < hi))
    fmask = fmask_b.astype(jnp.float32)                             # (1, BT)

    diff = logsm[:, 1:] - logsm[:, :-1]                             # (C, BT-1)
    mse_vals = jnp.clip(diff * diff, 0.0, 16.0) * fmask[:, 1:]
    mse_l = (mse_weight / float(B * C * (T - 1))) * jnp.sum(mse_vals, keepdims=True)

    # ---------------- feature-level contrastive loss ----------------------------------
    f1 = f1_ref[...].astype(jnp.float32)                            # (N, Cp)
    # sim = f1 @ f1.T (contract the feature dim of both operands).  Negligible MXU cost
    # at this size; at production N pad to (8,128)-aligned tiles / ship f1_T separately.
    sim = lax.dot_general(f1, f1, (((1,), (1,)), ((), ())),
                          preferred_element_type=jnp.float32)       # (N, N)
    f11 = jnp.exp(sim * (1.0 / temp))

    meta = meta_ref[...]                                            # (8 + 3N, N) f32
    vid_r, t_r, lbl_r = meta[0:1, :], meta[1:2, :], meta[2:3, :]    # (1, N) row forms
    vid_c = meta[8:8 + N, 0:1]                                      # (N, 1) column forms
    t_c = meta[8 + N:8 + 2 * N, 0:1]
    lbl_c = meta[8 + 2 * N:8 + 3 * N, 0:1]

    same_vid = vid_c == vid_r                                       # (N, N)
    close_t = jnp.abs(t_c - t_r) <= delta
    same_lbl = lbl_c == lbl_r

    pos_b = (same_vid & close_t & same_lbl) | ((~same_vid) & same_lbl)
    neg_minus = (same_vid & (~close_t) & same_lbl).astype(jnp.float32)

    row = lax.broadcasted_iota(jnp.int32, (N, N), 0)
    col = lax.broadcasted_iota(jnp.int32, (N, N), 1)
    eye = (row == col).astype(jnp.float32)

    posm = pos_b.astype(jnp.float32) - eye                          # diag of pos_b is 1
    not_same = 1.0 - posm - eye - neg_minus
    count_pos = jnp.sum(posm, keepdims=True)                        # (1, 1)

    feat_sim_pos = posm * f11
    # torch broadcasts sum(not_same*f11, dim=1) as a (1,N) row (column-indexed); the
    # matrix is exactly symmetric, so the axis=0 (sublane) reduction below is identical
    # and avoids an XLU lane reduction.
    neg_sum_row = jnp.sum(not_same * f11, axis=0, keepdims=True)    # (1, N)
    inv_den = pl.reciprocal(neg_sum_row + feat_sim_pos, approx=True)    # EUP slot
    sim_prob = feat_sim_pos * inv_den + not_same + eye + neg_minus
    log_sum = jnp.sum(jnp.log(sim_prob), keepdims=True)             # (1, 1)
    fc = -log_sum / jnp.maximum(count_pos, 1.0)
    fc = jnp.where(count_pos == 0.0, jnp.zeros_like(fc), fc)

    # TODO(synk): high_level_act_loss=True video-level contrast branch not implemented
    # (config disables it, activity_labels is None in this setup) -> contributes 0.
    total = ce + mse_l + fc

    # single lane-dense packed output row: [total, ce, mse, contrast, 0, ...]
    lane = lax.broadcasted_iota(jnp.int32, (1, _OUT_LANES), 1)
    out = jnp.where(lane == 0, total, 0.0)
    out = jnp.where(lane == 1, ce, out)
    out = jnp.where(lane == 2, mse_l, out)
    out = jnp.where(lane == 3, fc, out)
    out_ref[...] = out


# -------------------------------------------------------------------------------------
# Wrapper
# -------------------------------------------------------------------------------------
def _pack_meta(vid_ids, t1, label_info):
    """Pack (vid, t, label) metadata into ONE VMEM tile.

    rows 0..2                 : row-broadcast forms (1, N) of vid / t / label
    rows 8..8+N-1,    lane 0  : column-broadcast form (N, 1) of vid
    rows 8+N..8+2N-1, lane 0  : column form of t
    rows 8+2N..8+3N-1,lane 0  : column form of label
    All kernel slices are 8-aligned on sublanes and start at lane 0.  Row and column
    copies come from the same float32 array, so in-kernel float equality is exact.
    """
    n = len(vid_ids)
    meta = np.zeros((8 + 3 * n, n), np.float32)
    meta[0, :] = vid_ids
    meta[1, :] = t1
    meta[2, :] = label_info
    meta[8:8 + n, 0] = vid_ids
    meta[8 + n:8 + 2 * n, 0] = t1
    meta[8 + 2 * n:8 + 3 * n, 0] = label_info
    return meta


def c2ftcn_loss(pred, labels, count, f1, vid_ids, t1, label_info,
                *, mse_weight, delta, temp=0.1):
    """Fused C2FTCN criterion (unsupervised=False): CE + transition MSE + contrastive."""
    B, C, T = pred.shape
    N, _ = f1.shape

    # lane-dense layouts, bf16 over the wire (compute stays f32 in-kernel)
    pred2d = jnp.transpose(pred, (1, 0, 2)).reshape(C, B * T).astype(jnp.bfloat16)
    labels2d = jnp.asarray(labels, jnp.int32).reshape(1, B * T)
    count1d = jnp.asarray(count, jnp.int32).reshape(B)
    f1_bf = jnp.asarray(f1, jnp.bfloat16)
    meta = jnp.asarray(_pack_meta(np.asarray(vid_ids, np.float32),
                                  np.asarray(t1, np.float32),
                                  np.asarray(label_info, np.float32)))

    kern = functools.partial(_fused_kernel, B=B, C=C, T=T, N=N,
                             mse_weight=float(mse_weight), delta=float(delta),
                             temp=float(temp))
    # NOTE: at production C2FTCN lengths (T in the thousands) the CE/MSE part should get a
    # time-tiled grid (block a multiple of 128 lanes, "parallel" semantics for v7x's two
    # TensorCores, explicit vmem_limit_bytes).  At these tiny shapes one fused launch is
    # entirely launch-overhead-bound, so a grid would only add per-step cost.
    out = pl.pallas_call(
        kern,
        out_shape=jax.ShapeDtypeStruct((1, _OUT_LANES), jnp.float32),
        in_specs=[
            pl.BlockSpec(memory_space=pltpu.MemorySpace.VMEM),   # pred2d  (C, B*T) bf16
            pl.BlockSpec(memory_space=pltpu.MemorySpace.VMEM),   # labels  (1, B*T) int32
            pl.BlockSpec(memory_space=pltpu.MemorySpace.SMEM),   # count   (B,) int32
            pl.BlockSpec(memory_space=pltpu.MemorySpace.VMEM),   # f1      (N, Cp) bf16
            pl.BlockSpec(memory_space=pltpu.MemorySpace.VMEM),   # packed metadata f32
        ],
        out_specs=pl.BlockSpec(memory_space=pltpu.MemorySpace.VMEM),
    )(pred2d, labels2d, count1d, f1_bf, meta)
    return out[0, 0], out[0, 1], out[0, 2], out[0, 3]   # total, ce, mse, contrast


# -------------------------------------------------------------------------------------
# Host-side glue replicating the random per-video frame sampling / ragged gathers
# -------------------------------------------------------------------------------------
def sample_contrast_inputs(count_np, projection_np, labels_np, cfg, rng):
    # TODO(synk): np.random-based frame sampling + ragged per-video gathers stay on host
    # (data-dependent random indices) — only the dense contrastive math goes to the TPU kernel.
    B = projection_np.shape[0]
    f1_parts, vid_ids, t1, label_info = [], [], [], []
    for j in range(B):
        nf = int(count_np[j])
        split = np.linspace(0, nf, cfg.num_samples_frames).astype(np.int64)
        idx = []
        for k in range(len(split) - 1):
            start, end = int(split[k]), int(split[k + 1])
            idx.append(int(rng.choice(np.arange(start, end + 1), 1)[0]))
        idx = np.clip(np.asarray(idx, np.int64), 0, nf - 1)
        v_low = int(np.ceil(cfg.epsilon_l * nf))
        v_high = int(np.ceil(cfg.epsilon * nf))
        if v_high <= v_low:
            v_high = v_low + 2
        offset = rng.integers(low=v_low, high=v_high, size=(len(idx),))
        prev_idx = np.clip(idx - offset, 0, nf - 1)

        pj = projection_np[j].T                     # (T, Cp)
        f1_parts.append(pj[idx, :])
        f1_parts.append(pj[prev_idx, :])
        label_info.append(labels_np[j][idx])
        label_info.append(labels_np[j][prev_idx])
        vid_ids.extend([j] * len(idx))
        vid_ids.extend([j] * len(prev_idx))
        t1.extend((idx / nf).tolist())
        t1.extend((prev_idx / nf).tolist())
    f1 = np.concatenate(f1_parts, axis=0).astype(np.float32)
    return f1, np.asarray(vid_ids), np.asarray(t1), np.concatenate(label_info)


# -------------------------------------------------------------------------------------
# Pure numpy reference (exact PyTorch semantics) for correctness checking
# -------------------------------------------------------------------------------------
def reference_total(pred, labels, count, f1, vid_ids, t1, label_info, cfg, mse_weight):
    pred = np.asarray(pred, np.float32)
    labels = np.asarray(labels)
    count = np.asarray(count)
    B, C, T = pred.shape

    m = pred.max(axis=1, keepdims=True)
    logsm = pred - m - np.log(np.exp(pred - m).sum(axis=1, keepdims=True))

    valid = labels != -100
    safe = np.where(valid, labels, 0)
    nll = -np.take_along_axis(logsm, safe[:, None, :], axis=1)[:, 0, :]
    ce = (nll * valid).sum() / valid.sum()

    mask = (np.arange(T)[None, :] < count[:, None]).astype(np.float32)[:, None, :]
    diff = logsm[:, :, 1:] - logsm[:, :, :-1]
    mse = np.clip(diff * diff, 0.0, 16.0) * mask[:, :, 1:]
    mse_l = mse_weight * mse.mean()

    f1 = np.asarray(f1, np.float32)
    sim = f1 @ f1.T
    f11 = np.exp(sim / 0.1)
    vi, tt, li = vid_ids, t1, label_info
    same_vid = vi[:, None] == vi[None, :]
    close = np.abs(tt[:, None] - tt[None, :]) <= cfg.delta
    same_lbl = li[:, None] == li[None, :]
    pos = (((same_vid & close & same_lbl) | (~same_vid & same_lbl))).astype(np.float32)
    neg_minus = (same_vid & ~close & same_lbl).astype(np.float32)
    N = len(vi)
    I = np.eye(N, dtype=np.float32)
    pos = pos - I
    not_same = 1.0 - pos - I - neg_minus
    count_pos = pos.sum()
    if count_pos == 0:
        fc = 0.0
    else:
        feat_sim_pos = pos * f11
        neg_sum = (not_same * f11).sum(axis=1)
        sim_prob = feat_sim_pos / (neg_sum + feat_sim_pos) + not_same + I + neg_minus
        fc = -np.log(sim_prob).sum() / count_pos
    # cfg.high_level_act_loss is False -> video_level_contrast = 0
    return float(ce + mse_l + fc)


# -------------------------------------------------------------------------------------
if __name__ == "__main__":
    cfg = C2FTCNConfig()
    mse_weight = 0.15

    B, num_classes, T, Cp = 2, 4, 64, 32
    key = jax.random.PRNGKey(0)
    k1, k2, k3 = jax.random.split(key, 3)

    pred = jax.random.normal(k1, (B, num_classes, T), jnp.float32)          # logits (B, C, T)
    projection = 0.05 * jax.random.normal(k2, (B, Cp, T), jnp.float32)      # features (B, Cp, T)
    # pre-round to bf16-representable values so the bf16-over-the-wire kernel and the f32
    # reference see identical inputs (the kernel upcasts to f32 for all math).
    pred = pred.astype(jnp.bfloat16).astype(jnp.float32)
    projection = projection.astype(jnp.bfloat16).astype(jnp.float32)

    count_np = np.array([48, 56], np.int32)                                 # valid frames per video
    labels_np = np.array(jax.random.randint(k3, (B, T), 0, num_classes), np.int32)
    for j in range(B):
        labels_np[j, count_np[j]:] = -100                                   # pad -> ignore_index
    labels = jnp.asarray(labels_np)
    count = jnp.asarray(count_np)

    rng = np.random.default_rng(0)
    f1, vid_ids, t1, label_info = sample_contrast_inputs(
        count_np, np.asarray(projection), labels_np, cfg, rng)

    # unsupervised=False path: CE + MSE + contrastive, all from one fused pallas_call
    total, ce, mse_l, fc = c2ftcn_loss(pred, labels, count, f1, vid_ids, t1, label_info,
                                       mse_weight=mse_weight, delta=cfg.delta)
    total = jax.block_until_ready(total)

    ref = reference_total(np.asarray(pred), labels_np, count_np, f1,
                          vid_ids, t1, label_info, cfg, mse_weight)
    np.testing.assert_allclose(float(total), ref, rtol=1e-2, atol=2e-3)
    print("KERNEL_OK")
</pallas_src>

<mosaic_0001>
module attributes {stable_mosaic.version = 11 : i64} {
  func.func @_fused_kernel(%arg0: memref<4x128xbf16, #tpu.memory_space<vmem>>, %arg1: memref<1x128xi32, #tpu.memory_space<vmem>>, %arg2: memref<2xi32, #tpu.memory_space<smem>>, %arg3: memref<16x32xbf16, #tpu.memory_space<vmem>>, %arg4: memref<56x16xf32, #tpu.memory_space<vmem>>, %arg5: memref<1x128xf32, #tpu.memory_space<vmem>>) attributes {dimension_semantics = [], scalar_prefetch = 0 : i64, scratch_operands = 0 : i64, tpu.core_type = #tpu.core_type<tc>} {
    %c0 = arith.constant 0 : index
    %c0_0 = arith.constant 0 : index
    %0 = vector.load %arg0[%c0, %c0_0] : memref<4x128xbf16, #tpu.memory_space<vmem>>, vector<4x128xbf16>
    %1 = arith.extf %0 : vector<4x128xbf16> to vector<4x128xf32>
    %c0_1 = arith.constant 0 : index
    %c0_2 = arith.constant 0 : index
    %2 = vector.load %arg1[%c0_1, %c0_2] : memref<1x128xi32, #tpu.memory_space<vmem>>, vector<1x128xi32>
    %cst = arith.constant dense<0xFF800000> : vector<128xf32>
    %3 = vector.multi_reduction <maximumf>, %1, %cst [0] : vector<4x128xf32> to vector<128xf32>
    %4 = vector.shape_cast %3 : vector<128xf32> to vector<1x128xf32>
    %5 = vector.broadcast %4 : vector<1x128xf32> to vector<4x128xf32>
    %6 = arith.subf %1, %5 : vector<4x128xf32>
    %7 = math.exp %6 : vector<4x128xf32>
    %cst_3 = arith.constant dense<0.000000e+00> : vector<128xf32>
    %8 = vector.multi_reduction <add>, %7, %cst_3 [0] : vector<4x128xf32> to vector<128xf32>
    %9 = vector.shape_cast %8 : vector<128xf32> to vector<1x128xf32>
    %10 = math.log %9 : vector<1x128xf32>
    %11 = vector.broadcast %10 : vector<1x128xf32> to vector<4x128xf32>
    %12 = arith.subf %6, %11 : vector<4x128xf32>
    %c-100_i32 = arith.constant -100 : i32
    %13 = vector.broadcast %c-100_i32 : i32 to vector<1x128xi32>
    %14 = arith.cmpi ne, %2, %13 : vector<1x128xi32>
    %c0_i32 = arith.constant 0 : i32
    %15 = vector.broadcast %c0_i32 : i32 to vector<1x128xi32>
    %16 = arith.select %14, %2, %15 : vector<1x128xi1>, vector<1x128xi32>
    %17 = tpu.iota {dimensions = array<i32: 0>} : vector<4x128xi32>
    %18 = vector.broadcast %16 : vector<1x128xi32> to vector<4x128xi32>
    %19 = arith.cmpi eq, %17, %18 : vector<4x128xi32>
    %20 = arith.extui %19 : vector<4x128xi1> to vector<4x128xi32>
    %21 = arith.sitofp %20 : vector<4x128xi32> to vector<4x128xf32>
    %22 = arith.mulf %21, %12 : vector<4x128xf32>
    %cst_4 = arith.constant dense<0.000000e+00> : vector<128xf32>
    %23 = vector.multi_reduction <add>, %22, %cst_4 [0] : vector<4x128xf32> to vector<128xf32>
    %24 = vector.shape_cast %23 : vector<128xf32> to vector<1x128xf32>
    %cst_5 = arith.constant 0.000000e+00 : f32
    %25 = vector.broadcast %cst_5 : f32 to vector<1x128xf32>
    %26 = arith.subf %25, %24 : vector<1x128xf32>
    %27 = arith.extui %14 : vector<1x128xi1> to vector<1x128xi32>
    %28 = arith.sitofp %27 : vector<1x128xi32> to vector<1x128xf32>
    %29 = vector.shape_cast %28 : vector<1x128xf32> to vector<1x1x128xf32>
    %cst_6 = arith.constant dense<0.000000e+00> : vector<1xf32>
    %30 = vector.multi_reduction <add>, %29, %cst_6 [1, 2] : vector<1x1x128xf32> to vector<1xf32>
    %31 = vector.shape_cast %30 : vector<1xf32> to vector<1x1x1xf32>
    %32 = vector.extract %31[0, 0, 0] : f32 from vector<1x1x1xf32>
    %33 = vector.broadcast %32 : f32 to vector<1x1xf32>
    %cst_7 = arith.constant 1.000000e+00 : f32
    %34 = vector.broadcast %cst_7 : f32 to vector<1x1xf32>
    %35 = arith.maximumf %33, %34 : vector<1x1xf32>
    %36 = arith.mulf %26, %28 : vector<1x128xf32>
    %37 = vector.shape_cast %36 : vector<1x128xf32> to vector<1x1x128xf32>
    %cst_8 = arith.constant dense<0.000000e+00> : vector<1xf32>
    %38 = vector.multi_reduction <add>, %37, %cst_8 [1, 2] : vector<1x1x128xf32> to vector<1xf32>
    %39 = vector.shape_cast %38 : vector<1xf32> to vector<1x1x1xf32>
    %40 = vector.extract %39[0, 0, 0] : f32 from vector<1x1x1xf32>
    %41 = vector.broadcast %40 : f32 to vector<1x1xf32>
    %42 = arith.divf %41, %35 : vector<1x1xf32>
    %43 = tpu.iota {dimensions = array<i32: 1>} : vector<1x128xi32>
    %c0_i32_9 = arith.constant 0 : i32
    %44 = vector.broadcast %c0_i32_9 : i32 to vector<1x128xi32>
    %45 = arith.cmpi slt, %43, %44 : vector<1x128xi32>
    %c0_10 = arith.constant 0 : index
    %46 = memref.load %arg2[%c0_10] : memref<2xi32, #tpu.memory_space<smem>>
    %c0_i32_11 = arith.constant 0 : i32
    %47 = arith.addi %c0_i32_11, %46 : i32
    %c1_i32 = arith.constant 1 : i32
    %48 = vector.broadcast %c1_i32 : i32 to vector<1x128xi32>
    %49 = arith.cmpi sge, %43, %48 : vector<1x128xi32>
    %50 = vector.broadcast %47 : i32 to vector<1x128xi32>
    %51 = arith.cmpi slt, %43, %50 : vector<1x128xi32>
    %52 = arith.andi %49, %51 : vector<1x128xi1>
    %53 = arith.ori %45, %52 : vector<1x128xi1>
    %c1 = arith.constant 1 : index
    %54 = memref.load %arg2[%c1] : memref<2xi32, #tpu.memory_space<smem>>
    %c64_i32 = arith.constant 64 : i32
    %55 = arith.addi %c64_i32, %54 : i32
    %c65_i32 = arith.constant 65 : i32
    %56 = vector.broadcast %c65_i32 : i32 to vector<1x128xi32>
    %57 = arith.cmpi sge, %43, %56 : vector<1x128xi32>
    %58 = vector.broadcast %55 : i32 to vector<1x128xi32>
    %59 = arith.cmpi slt, %43, %58 : vector<1x128xi32>
    %60 = arith.andi %57, %59 : vector<1x128xi1>
    %61 = arith.ori %53, %60 : vector<1x128xi1>
    %62 = arith.extui %61 : vector<1x128xi1> to vector<1x128xi32>
    %63 = arith.sitofp %62 : vector<1x128xi32> to vector<1x128xf32>
    %64 = vector.extract_strided_slice %12 {offsets = [0, 1], sizes = [4, 127], strides = [1, 1]} : vector<4x128xf32> to vector<4x127xf32>
    %65 = vector.extract_strided_slice %12 {offsets = [0, 0], sizes = [4, 127], strides = [1, 1]} : vector<4x128xf32> to vector<4x127xf32>
    %66 = arith.subf %64, %65 : vector<4x127xf32>
    %67 = arith.mulf %66, %66 : vector<4x127xf32>
    %cst_12 = arith.constant 0.000000e+00 : f32
    %cst_13 = arith.constant 1.600000e+01 : f32
    %68 = vector.broadcast %cst_12 : f32 to vector<4x127xf32>
    %69 = arith.maximumf %68, %67 : vector<4x127xf32>
    %70 = vector.broadcast %cst_13 : f32 to vector<4x127xf32>
    %71 = arith.minimumf %70, %69 : vector<4x127xf32>
    %72 = vector.extract_strided_slice %63 {offsets = [0, 1], sizes = [1, 127], strides = [1, 1]} : vector<1x128xf32> to vector<1x127xf32>
    %73 = vector.broadcast %72 : vector<1x127xf32> to vector<4x127xf32>
    %74 = arith.mulf %71, %73 : vector<4x127xf32>
    %75 = vector.shape_cast %74 : vector<4x127xf32> to vector<1x4x127xf32>
    %cst_14 = arith.constant dense<0.000000e+00> : vector<1xf32>
    %76 = vector.multi_reduction <add>, %75, %cst_14 [1, 2] : vector<1x4x127xf32> to vector<1xf32>
    %77 = vector.shape_cast %76 : vector<1xf32> to vector<1x1x1xf32>
    %78 = vector.extract %77[0, 0, 0] : f32 from vector<1x1x1xf32>
    %79 = vector.broadcast %78 : f32 to vector<1x1xf32>
    %cst_15 = arith.constant 2.97619059E-4 : f32
    %80 = vector.broadcast %cst_15 : f32 to vector<1x1xf32>
    %81 = arith.mulf %80, %79 : vector<1x1xf32>
    %c0_16 = arith.constant 0 : index
    %c0_17 = arith.constant 0 : index
    %82 = vector.load %arg3[%c0_16, %c0_17] : memref<16x32xbf16, #tpu.memory_space<vmem>>, vector<16x32xbf16>
    %83 = arith.extf %82 : vector<16x32xbf16> to vector<16x32xf32>
    %cst_18 = arith.constant dense<0.000000e+00> : vector<16x16xf32>
    %84 = tpu.matmul %83, %83, %cst_18 {dimension_numbers = #tpu.dot_dimension_numbers<[1], [1], [0], [0], [0, 0, 1, 0], [], []>} : vector<16x32xf32>, vector<16x32xf32>, vector<16x16xf32> -> vector<16x16xf32>
    %cst_19 = arith.constant 1.000000e+01 : f32
    %85 = vector.broadcast %cst_19 : f32 to vector<16x16xf32>
    %86 = arith.mulf %84, %85 : vector<16x16xf32>
    %87 = math.exp %86 : vector<16x16xf32>
    %c0_20 = arith.constant 0 : index
    %c0_21 = arith.constant 0 : index
    %88 = vector.load %arg4[%c0_20, %c0_21] : memref<56x16xf32, #tpu.memory_space<vmem>>, vector<56x16xf32>
    %89 = vector.extract_strided_slice %88 {offsets = [0, 0], sizes = [1, 16], strides = [1, 1]} : vector<56x16xf32> to vector<1x16xf32>
    %90 = vector.extract_strided_slice %88 {offsets = [1, 0], sizes = [1, 16], strides = [1, 1]} : vector<56x16xf32> to vector<1x16xf32>
    %91 = vector.extract_strided_slice %88 {offsets = [2, 0], sizes = [1, 16], strides = [1, 1]} : vector<56x16xf32> to vector<1x16xf32>
    %92 = vector.extract_strided_slice %88 {offsets = [8, 0], sizes = [16, 1], strides = [1, 1]} : vector<56x16xf32> to vector<16x1xf32>
    %93 = vector.extract_strided_slice %88 {offsets = [24, 0], sizes = [16, 1], strides = [1, 1]} : vector<56x16xf32> to vector<16x1xf32>
    %94 = vector.extract_strided_slice %88 {offsets = [40, 0], sizes = [16, 1], strides = [1, 1]} : vector<56x16xf32> to vector<16x1xf32>
    %95 = vector.broadcast %92 : vector<16x1xf32> to vector<16x16xf32>
    %96 = vector.broadcast %89 : vector<1x16xf32> to vector<16x16xf32>
    %97 = arith.cmpf oeq, %95, %96 : vector<16x16xf32>
    %98 = vector.broadcast %93 : vector<16x1xf32> to vector<16x16xf32>
    %99 = vector.broadcast %90 : vector<1x16xf32> to vector<16x16xf32>
    %100 = arith.subf %98, %99 : vector<16x16xf32>
    %101 = math.absf %100 : vector<16x16xf32>
    %cst_22 = arith.constant 5.000000e-02 : f32
    %102 = vector.broadcast %cst_22 : f32 to vector<16x16xf32>
    %103 = arith.cmpf ole, %101, %102 : vector<16x16xf32>
    %104 = vector.broadcast %94 : vector<16x1xf32> to vector<16x16xf32>
    %105 = vector.broadcast %91 : vector<1x16xf32> to vector<16x16xf32>
    %106 = arith.cmpf oeq, %104, %105 : vector<16x16xf32>
    %107 = arith.andi %97, %103 : vector<16x16xi1>
    %108 = arith.andi %107, %106 : vector<16x16xi1>
    %cst_23 = arith.constant dense<true> : vector<16x16xi1>
    %109 = arith.xori %97, %cst_23 : vector<16x16xi1>
    %110 = arith.andi %109, %106 : vector<16x16xi1>
    %111 = arith.ori %108, %110 : vector<16x16xi1>
    %cst_24 = arith.constant dense<true> : vector<16x16xi1>
    %112 = arith.xori %103, %cst_24 : vector<16x16xi1>
    %113 = arith.andi %97, %112 : vector<16x16xi1>
    %114 = arith.andi %113, %106 : vector<16x16xi1>
    %115 = arith.extui %114 : vector<16x16xi1> to vector<16x16xi32>
    %116 = arith.sitofp %115 : vector<16x16xi32> to vector<16x16xf32>
    %117 = tpu.iota {dimensions = array<i32: 0>} : vector<16x16xi32>
    %118 = tpu.iota {dimensions = array<i32: 1>} : vector<16x16xi32>
    %119 = arith.cmpi eq, %117, %118 : vector<16x16xi32>
    %120 = arith.extui %119 : vector<16x16xi1> to vector<16x16xi32>
    %121 = arith.sitofp %120 : vector<16x16xi32> to vector<16x16xf32>
    %122 = arith.extui %111 : vector<16x16xi1> to vector<16x16xi32>
    %123 = arith.sitofp %122 : vector<16x16xi32> to vector<16x16xf32>
    %124 = arith.subf %123, %121 : vector<16x16xf32>
    %cst_25 = arith.constant 1.000000e+00 : f32
    %125 = vector.broadcast %cst_25 : f32 to vector<16x16xf32>
    %126 = arith.subf %125, %124 : vector<16x16xf32>
    %127 = arith.subf %126, %121 : vector<16x16xf32>
    %128 = arith.subf %127, %116 : vector<16x16xf32>
    %129 = vector.shape_cast %124 : vector<16x16xf32> to vector<1x16x16xf32>
    %cst_26 = arith.constant dense<0.000000e+00> : vector<1xf32>
    %130 = vector.multi_reduction <add>, %129, %cst_26 [1, 2] : vector<1x16x16xf32> to vector<1xf32>
    %131 = vector.shape_cast %130 : vector<1xf32> to vector<1x1x1xf32>
    %132 = vector.extract %131[0, 0, 0] : f32 from vector<1x1x1xf32>
    %133 = vector.broadcast %132 : f32 to vector<1x1xf32>
    %134 = arith.mulf %124, %87 : vector<16x16xf32>
    %135 = arith.mulf %128, %87 : vector<16x16xf32>
    %cst_27 = arith.constant dense<0.000000e+00> : vector<16xf32>
    %136 = vector.multi_reduction <add>, %135, %cst_27 [0] : vector<16x16xf32> to vector<16xf32>
    %137 = vector.shape_cast %136 : vector<16xf32> to vector<1x16xf32>
    %138 = vector.broadcast %137 : vector<1x16xf32> to vector<16x16xf32>
    %139 = arith.addf %138, %134 : vector<16x16xf32>
    %140 = tpu.reciprocal %139 {approx = true} : vector<16x16xf32> -> vector<16x16xf32>
    %141 = arith.mulf %134, %140 : vector<16x16xf32>
    %142 = arith.addf %141, %128 : vector<16x16xf32>
    %143 = arith.addf %142, %121 : vector<16x16xf32>
    %144 = arith.addf %143, %116 : vector<16x16xf32>
    %145 = math.log %144 : vector<16x16xf32>
    %146 = vector.shape_cast %145 : vector<16x16xf32> to vector<1x16x16xf32>
    %cst_28 = arith.constant dense<0.000000e+00> : vector<1xf32>
    %147 = vector.multi_reduction <add>, %146, %cst_28 [1, 2] : vector<1x16x16xf32> to vector<1xf32>
    %148 = vector.shape_cast %147 : vector<1xf32> to vector<1x1x1xf32>
    %149 = vector.extract %148[0, 0, 0] : f32 from vector<1x1x1xf32>
    %150 = vector.broadcast %149 : f32 to vector<1x1xf32>
    %cst_29 = arith.constant 0.000000e+00 : f32
    %151 = vector.broadcast %cst_29 : f32 to vector<1x1xf32>
    %152 = arith.subf %151, %150 : vector<1x1xf32>
    %cst_30 = arith.constant 1.000000e+00 : f32
    %153 = vector.broadcast %cst_30 : f32 to vector<1x1xf32>
    %154 = arith.maximumf %133, %153 : vector<1x1xf32>
    %155 = arith.divf %152, %154 : vector<1x1xf32>
    %cst_31 = arith.constant 0.000000e+00 : f32
    %156 = vector.broadcast %cst_31 : f32 to vector<1x1xf32>
    %157 = arith.cmpf oeq, %133, %156 : vector<1x1xf32>
    %cst_32 = arith.constant 0.000000e+00 : f32
    %158 = vector.broadcast %cst_32 : f32 to vector<1x1xf32>
    %159 = arith.select %157, %158, %155 : vector<1x1xi1>, vector<1x1xf32>
    %160 = arith.addf %42, %81 : vector<1x1xf32>
    %161 = arith.addf %160, %159 : vector<1x1xf32>
    %162 = tpu.iota {dimensions = array<i32: 1>} : vector<1x128xi32>
    %c0_i32_33 = arith.constant 0 : i32
    %163 = vector.broadcast %c0_i32_33 : i32 to vector<1x128xi32>
    %164 = arith.cmpi eq, %162, %163 : vector<1x128xi32>
    %cst_34 = arith.constant 0.000000e+00 : f32
    %165 = vector.shape_cast %161 : vector<1x1xf32> to vector<1x1xf32>
    %166 = vector.broadcast %165 : vector<1x1xf32> to vector<1x128xf32>
    %167 = vector.broadcast %cst_34 : f32 to vector<1x128xf32>
    %168 = arith.select %164, %166, %167 : vector<1x128xi1>, vector<1x128xf32>
    %c1_i32_35 = arith.constant 1 : i32
    %169 = vector.broadcast %c1_i32_35 : i32 to vector<1x128xi32>
    %170 = arith.cmpi eq, %162, %169 : vector<1x128xi32>
    %171 = vector.shape_cast %42 : vector<1x1xf32> to vector<1x1xf32>
    %172 = vector.broadcast %171 : vector<1x1xf32> to vector<1x128xf32>
    %173 = arith.select %170, %172, %168 : vector<1x128xi1>, vector<1x128xf32>
    %c2_i32 = arith.constant 2 : i32
    %174 = vector.broadcast %c2_i32 : i32 to vector<1x128xi32>
    %175 = arith.cmpi eq, %162, %174 : vector<1x128xi32>
    %176 = vector.shape_cast %81 : vector<1x1xf32> to vector<1x1xf32>
    %177 = vector.broadcast %176 : vector<1x1xf32> to vector<1x128xf32>
    %178 = arith.select %175, %177, %173 : vector<1x128xi1>, vector<1x128xf32>
    %c3_i32 = arith.constant 3 : i32
    %179 = vector.broadcast %c3_i32 : i32 to vector<1x128xi32>
    %180 = arith.cmpi eq, %162, %179 : vector<1x128xi32>
    %181 = vector.shape_cast %159 : vector<1x1xf32> to vector<1x1xf32>
    %182 = vector.broadcast %181 : vector<1x1xf32> to vector<1x128xf32>
    %183 = arith.select %180, %182, %178 : vector<1x128xi1>, vector<1x128xf32>
    %c0_36 = arith.constant 0 : index
    %c0_37 = arith.constant 0 : index
    %184 = vector.load %arg5[%c0_36, %c0_37] : memref<1x128xf32, #tpu.memory_space<vmem>>, vector<1x128xf32>
    tpu.vector_store %arg5[%c0_36, %c0_37], %183 {strides = array<i32>} : memref<1x128xf32, #tpu.memory_space<vmem>>, vector<1x128xf32>,
    return
  }
}

</mosaic_0001>

<bundles_post_ra>
// kernel: tpu_custom_call.1
= control target key start
LH: loop header
LB: loop body
LE: loop exit
PB: predicated region body
PF: predicated region fallthrough
CT: control target
= control target key end

     0   :  { %10 = vsyncpa [#allocation4], 0  ;;  %s706_s0 = inlined_call_operand.vmem [shape: bf16[4,128], index: 0, kind: input, shape index: {}]   ;;  %s707_s1 = inlined_call_operand.vmem [shape: s32[1,128], index: 1, kind: input, shape index: {}]   ;;  %s708_s2 = inlined_call_operand.vmem [shape: s32[2], index: 2, kind: input, shape index: {}]   ;;  %s709_s3 = inlined_call_operand.vmem [shape: bf16[16,32], index: 3, kind: input, shape index: {}]   ;;  %s710_s4 = inlined_call_operand.vmem [shape: f32[56,16], index: 4, kind: input, shape index: {}]   ;;  %s711_s5 = inlined_call_operand.hbm [shape: f32[1,128], index: 5, kind: output, shape index: {}]  }
   0x1   :  { %11 = vsyncpa [#allocation3], 0  ;;  %s22_s20 = sshll.u32 %s708_s2, 4  ;;  %s23_s20 = int_to_ptr.vmem [resolvable:$true] %s22_s20 }
   0x2   :  { %s503_s21 = scalar_lea.vmem %s23_s20, 16  ;;  %p508_p1 = scmp.lt.s32.totalorder %s23_s20, %s23_s20 }
   0x3   :  { %p504_p0 = scmp.ne.s32.totalorder %s23_s20, %s503_s21  ;;  %p509_p2 = scmp.lt.s32.totalorder %s503_s21, %s503_s21 }
   0x5   :  { %p510_p3 = por %p509_p2, %p508_p1 }
   0x7   :  { %p511_p4 = pnand %p510_p3, %p504_p0 }
   0x9   :  { %514 = shalt.err (!%p511_p4)
}
   0xa   :  { %s541_s22 = smov [#allocation2]  }
   0xb   :  { %25 = dma.vmem_to_smem %s23_s20, 16, %s541_s22, [#allocation4]  }
   0xc   :  { %537 = dma.done.wait [#allocation4], 16  }
   0xd   :  { %538 = vsyncadd [#allocation4], 4294967280 }
   0xe   :  { %33 = sfence }
   0xf   :  { %v444_v0 = vld [vmem:[%s709_s3] sm:$0xff]   ;;  %vm155_vm0 = vcmask 261120   ;;  %vm37_vm1 = vcmask 1043456   ;;  %v542_v5 = vmov 0   ;;  %v244_v8 = vld [vmem:[%s710_s4 + $0x8] sm:$0xff]  ;;  %v245_v12 = vld [vmem:[%s710_s4 + $0x10] sm:$0xff]  ;;  %v60_v36 = vlaneseq }
  0x10   :  { %v34_v1 = vld [vmem:[%s706_s0] sm:$0x3]  ;;  %vm459_vm2 = vmpackc.low %vm155_vm0, %vm155_vm0  ;;  %v445_v2 = vunpack.c.l.bf16 %v444_v0  ;;  %482 = vset.pattern.permute.xlu1 %v542_v5  ;;  %481 = vset.pattern.permute.xlu0 %v542_v5  ;;  %v446_v9 = vunpack.c.h.bf16 %v444_v0  ;;  %v249_v15 = vld [vmem:[%s710_s4 + $0x30] sm:$0xff]  ;;  %s543_s7 = smov 1   ;;  %v544_v33 = vmov 0.0   ;;  %vm80_vm4 = vcmask 1040384  }
  0x11   :  { %v35_v3 = vunpack.c.l.bf16 %v34_v1  ;;  %v247_v4 = vld [vmem:[%s710_s4 + $0x20] sm:$0xff]  ;;  %460 = vmatprep.subr.msk.bf16.mxu0 %vm459_vm2, %v444_v0  ;;  %v246_v30 = vld [vmem:[%s710_s4 + $0x18] sm:$0xff]  ;;  %v248_v31 = vld [vmem:[%s710_s4 + $0x28] sm:$0xff]  ;;  %v616_v37 = vshrl.u32 %v60_v36, 7  ;;  %s110_s14 = sld [smem:[#allocation2]]  ;;  %v625_v53 = vand.u32 127, %v60_v36 }
  0x12   :  { %463 = vmatpush3.bf16.xpose.msk.msra.mxu0 %vm459_vm2, %v444_v0  ;;  %455 = vmatprep.mubr.msk.f32.mxu0 %vm155_vm0, %v445_v2  ;;  %v36_v32 = vld [vmem:[%s707_s1] sm:$0x1]  ;;  %s431_s1 = sld [smem:[#allocation2 + $0x1]]  ;;  %s547_s23 = smov [#allocation5]  }
  0x13   :  { %v38_v6 = vsel %vm37_vm1, %v35_v3, -inf  ;;  %273 = vperm.xlu1 %482, %v247_v4   ;;  %vm58_vm3 = vcmp.ne.s32.totalorder %v36_v32, 4294967196  ;;  %v64_v38 = vsub.s32 0, %v616_v37  ;;  %v278_v57 = vsub.s32 1, %v616_v37  ;;  %v243_v58 = vld [vmem:[%s710_s4] sm:$0xff]  ;;  %s545_s4 = smov 127  }
  0x14   :  { %v39_v7 = vrot.slane %v38_v6, 4  ;;  %v430_v34 = vsel %vm58_vm3, 1.0, %v544_v33  ;;  %v59_v39 = vsel %vm58_vm3, %v36_v32, 0  ;;  %vm111_vm6 = vcmp.ge.s32.totalorder %v625_v53, 1  ;;  %s420_s24 = sshll.u32 %s547_s23, 4  ;;  %s421_s24 = int_to_ptr.vmem [resolvable:$true] %s420_s24 }
  0x15   :  { %v81_v35 = vsel %vm80_vm4, %v430_v34, 0.0  ;;  %v65_v40 = vrot.slane %v59_v39, %v64_v38  ;;  %vm118_vm8 = vcmp.ge.s32.totalorder %v625_v53, 65  ;;  %v279_v59 = vrot.slane %v243_v58, %v278_v57  ;;  %s515_s25 = scalar_lea.vmem %s421_s24, 16  ;;  %s519_s2 = scalar_lea.vmem %s421_s24, 32 }
  0x16   :  { %v40_v10 = vmax.f32 %v38_v6, %v39_v7  ;;  %v263_v6 = vrot.slane %v243_v58, %v64_v38  ;;  %p516_p5 = scmp.ne.s32.totalorder %s421_s24, %s515_s25  ;;  %p520_p6 = scmp.lt.s32.totalorder %s421_s24, %s421_s24 }
  0x17   :  { %252 = vperm.xlu1 %482, %v244_v8   ;;  %vm66_vm5 = vcmp.eq.s32.totalorder %v616_v37, %v65_v40  ;;  %v112_v55 = vstv %s110_s14  ;;  %p521_p7 = scmp.lt.s32.totalorder %s519_s2, %s515_s25 }
  0x18   :  { %v41_v11 = vrot.slane %v40_v10, 2  ;;  %v429_v41 = vsel %vm66_vm5, 1.0, %v544_v33  ;;  %s117_s15 = sadd.s32 64, %s431_s1  ;;  %vm113_vm7 = vcmp.lt.s32.totalorder %v625_v53, %v112_v55 }
  0x19   :  { %456 = vmatmul.mubr.msk.f32.vlgmr.msra.gmra.mrb[0].mxu0 %vm155_vm0, %v446_v9  ;;  %v119_v56 = vstv %s117_s15  ;;  %vm114_vm10 = vmand %vm111_vm6, %vm113_vm7  ;;  %p522_p8 = por %p521_p7, %p520_p6 }
  0x1a   :  { %v42_v13 = vmax.f32 %v40_v10, %v41_v11  ;;  %vm120_vm9 = vcmp.lt.s32.totalorder %v625_v53, %v119_v56  ;;  %v322_v11 = vadd.s32 8, %v616_v37 }
  0x1b   :  { %257 = vperm.xlu1 %482, %v245_v12   ;;  %vm121_vm11 = vmand %vm118_vm8, %vm120_vm9  ;;  %p523_p9 = pnand %p522_p8, %p516_p5 }
  0x1c   :  { %v43_v14 = vrot.slane %v42_v13, 1  ;;  %vm122_vm12 = vmor %vm114_vm10, %vm121_vm11  ;;  %vm324_vm7 = vcmp.eq.s32.totalorder %v322_v11, %v625_v53 }
  0x1d   :  { %v432_v4 = vsel %vm122_vm12, 1.0, %v544_v33  ;;  %vm323_vm12 = vcmp.eq.s32.totalorder %v616_v37, %v625_v53 }
  0x1e   :  { %v44_v16 = vmax.f32 %v42_v13, %v43_v14 }
  0x1f   :  { %293 = vperm.xlu1 %482, %v249_v15  }
  0x20   :  { %v45_v17 = vsub.f32 %v35_v3, %v44_v16  ;;  %v298_v3 = vsub.s32 2, %v616_v37  ;;  %v652_v16 = vsel %vm324_vm7, 1.0, %v544_v33 }
  0x22   :  { %v46_v18 = vmul.f32 1.442695, %v45_v17  ;;  %v299_v9 = vrot.slane %v243_v58, %v298_v3 }
  0x24   :  { %483 = vpow2.f32 %v46_v18 }
  0x2e   :  { %v484_v19 = vpop.eup %483 }
  0x2f   :  { %v48_v20 = vsel %vm37_vm1, %v484_v19, 0.0  ;;  %v663_v19 = vsel %vm323_vm12, 1.0, %v544_v33 }
  0x30   :  { %v49_v21 = vrot.slane %v48_v20, 4 }
  0x32   :  { %v50_v22 = vadd.f32 %v49_v21, %v48_v20 }
  0x34   :  { %v51_v23 = vrot.slane %v50_v22, 2 }
  0x36   :  { %v52_v24 = vadd.f32 %v51_v23, %v50_v22 }
  0x38   :  { %v53_v25 = vrot.slane %v52_v24, 1 }
  0x3a   :  { %v54_v26 = vadd.f32 %v53_v25, %v52_v24 }
  0x3c   :  { %485 = vlog2.f32 %v54_v26 }
  0x43   :  { %82 = vadd.xlane.f32.xlu1 %v81_v35 }
  0x46   :  { %v486_v27 = vpop.eup %485 }
  0x47   :  { %v56_v28 = vmul.f32 0.6931472, %v486_v27 }
  0x49   :  { %v57_v29 = vsub.f32 %v45_v17, %v56_v28 }
  0x4b   :  { %126 = vrot.lane.b32.xlu0 %v57_v29, %s543_s7  ;;  %v69_v42 = vmul.f32 %v429_v41, %v57_v29 }
  0x4d   :  { %v70_v43 = vsel %vm37_vm1, %v69_v42, 0.0  ;;  %vm546_vm1 = vmmov 1  }
  0x4e   :  { %v71_v44 = vrot.slane %v70_v43, 4 }
  0x4f   :  { %268 = vperm.xlu0 %481, %v246_v30  }
  0x50   :  { %v72_v45 = vadd.f32 %v71_v44, %v70_v43 }
  0x52   :  { %v73_v46 = vrot.slane %v72_v45, 2 }
  0x53   :  { %288 = vperm.xlu0 %481, %v248_v31  }
  0x54   :  { %v74_v47 = vadd.f32 %v73_v46, %v72_v45 }
  0x56   :  { %v75_v48 = vrot.slane %v74_v47, 1 }
  0x58   :  { %v76_v49 = vadd.f32 %v75_v48, %v74_v47 }
  0x5a   :  { %v77_v50 = vsub.f32 0.0, %v76_v49 }
  0x5c   :  { %v93_v51 = vmul.f32 %v430_v34, %v77_v50 }
  0x5e   :  { %v623_v52 = vsel %vm80_vm4, %v93_v51, 0.0 }
  0x92   :  { %v274_v54 = vpop.permute.xlu1 %273 }
  0x93   :  { %v281_v63 = vsub.f32 %v274_v54, %v279_v59 }
  0x95   :  { %v283_v5 = vand.u32 2147483647, %v281_v63 }
  0x96   :  { %v635_v60 = vpop.permute.xlu1 %252 }
  0x97   :  { %vm285_vm13 = vcmp.le.f32.partialorder %v283_v5, 0.05  ;;  %vm264_vm5 = vcmp.eq.f32.partialorder %v635_v60, %v263_v6 }
  0x98   :  { %vm306_vm11 = vmxor %vm264_vm5, %vm546_vm1 }
  0x9a   :  { %v258_v1 = vpop.permute.xlu1 %257 }
  0x9b   :  { %vm265_vm14 = vcmp.eq.f32.partialorder %v258_v1, %v263_v6 }
  0x9c   :  { %vm303_vm15 = vmand %vm265_vm14, %vm285_vm13 }
  0x9d   :  { %vm307_vm2 = vmxor %vm265_vm14, %vm546_vm1 }
  0x9e   :  { %v294_v10 = vpop.permute.xlu1 %293 }
  0x9f   :  { %vm301_vm0 = vcmp.eq.f32.partialorder %v294_v10, %v299_v9 }
  0xa0   :  { %vm305_vm3 = vmand %vm303_vm15, %vm301_vm0 }
  0xa1   :  { %vm309_vm4 = vmand %vm307_vm2, %vm301_vm0  ;;  %vm341_vm2 = vcmask 130048  }
  0xa2   :  { %vm311_vm6 = vmor %vm305_vm3, %vm309_vm4 }
  0xa3   :  { %v442_v17 = vsel %vm311_vm6, 1.0, %v544_v33  ;;  %vm313_vm6 = vmxor %vm285_vm13, %vm546_vm1 }
  0xa4   :  { %v334_v18 = vsub.f32 %v442_v17, %v652_v16 }
  0xa6   :  { %v343_v22 = vsel %vm341_vm2, %v334_v18, 0.0  ;;  %v336_v31 = vsub.f32 1.0, %v334_v18 }
  0xa8   :  { %v338_v34 = vsub.f32 %v336_v31, %v652_v16 }
  0xbd   :  { %v127_v61 = vpop.permute.xlu0 %126 }
  0xbe   :  { %v129_v62 = vsub.f32 %v57_v29, %v127_v61 }
  0xc0   :  { %v130_v0 = vmul.f32 %v129_v62, %v129_v62 }
  0xc2   :  { %v131_v2 = vmax.f32 %v130_v0, 0.0 }
  0xc4   :  { %v132_v7 = vmin.f32 %v131_v2, 16.0 }
  0xc6   :  { %v133_v8 = vmul.f32 %v432_v4, %v132_v7 }
  0xc8   :  { %135 = vrot.lane.b32.xlu0 %v133_v8, %s545_s4 }
  0xce   :  { %v269_v12 = vpop.permute.xlu0 %268 }
  0xcf   :  { %v280_v13 = vsub.f32 %v269_v12, %v279_v59 }
  0xd0   :  { %v83_v49 = vpop.xlane.xlu1 %82 }
  0xd1   :  { %v282_v14 = vand.u32 2147483647, %v280_v13  ;;  %v84_v51 = vrot.slane %v83_v49, 4 }
  0xd2   :  { %v289_v15 = vpop.permute.xlu0 %288 }
  0xd3   :  { %vm284_vm8 = vcmp.le.f32.partialorder %v282_v14, 0.05  ;;  %vm300_vm10 = vcmp.eq.f32.partialorder %v289_v15, %v299_v9  ;;  %v85_v54 = vadd.f32 %v84_v51, %v83_v49 }
  0xd4   :  { %vm302_vm9 = vmand %vm264_vm5, %vm284_vm8 }
  0xd5   :  { %vm304_vm15 = vmand %vm302_vm9, %vm300_vm10 }
  0xd6   :  { %vm308_vm3 = vmand %vm306_vm11, %vm300_vm10 }
  0xd7   :  { %vm310_vm4 = vmor %vm304_vm15, %vm308_vm3 }
  0xd8   :  { %v441_v20 = vsel %vm310_vm4, 1.0, %v544_v33  ;;  %vm312_vm7 = vmxor %vm284_vm8, %vm546_vm1  ;;  %vm405_vm1 = vcmp.eq.s32.totalorder %v625_v53, 0  ;;  %vm409_vm8 = vcmp.eq.s32.totalorder %v625_v53, 2 }
  0xd9   :  { %v333_v21 = vsub.f32 %v441_v20, %v663_v19  ;;  %vm315_vm9 = vmand %vm265_vm14, %vm313_vm6  ;;  %vm138_vm14 = vcmask 1035264  }
  0xda   :  { %vm314_vm11 = vmand %vm264_vm5, %vm312_vm7  ;;  %vm407_vm5 = vcmp.eq.s32.totalorder %v625_v53, 1 }
  0xdb   :  { %v342_v23 = vsel %vm341_vm2, %v333_v21, 0.0  ;;  %v335_v32 = vsub.f32 1.0, %v333_v21  ;;  %vm317_vm13 = vmand %vm315_vm9, %vm301_vm0 }
  0xdc   :  { %v344_v24 = vadd.f32 %v343_v22, %v342_v23  ;;  %vm316_vm12 = vmand %vm314_vm11, %vm300_vm10  ;;  %v438_v35 = vsel %vm317_vm13, 1.0, %v544_v33  ;;  %vm411_vm10 = vcmp.eq.s32.totalorder %v625_v53, 3 }
  0xdd   :  { %v337_v36 = vsub.f32 %v335_v32, %v663_v19  ;;  %v437_v37 = vsel %vm316_vm12, 1.0, %v544_v33  ;;  %v340_v38 = vsub.f32 %v338_v34, %v438_v35  ;;  %v86_v33 = vrot.slane %v85_v54, 2 }
  0xde   :  { %345 = vadd.xlane.f32.xlu1 %v344_v24 }
  0xdf   :  { %v339_v39 = vsub.f32 %v337_v36, %v437_v37  ;;  %v87_v59 = vadd.f32 %v86_v33, %v85_v54 }
  0xe1   :  { %v88_v62 = vrot.slane %v87_v59, 1 }
  0xe3   :  { %v89_v63 = vadd.f32 %v88_v62, %v87_v59 }
  0xe5   :  { %464 = vpush %v89_v63 }
  0xe7   :  { %95 = vadd.xlane.f32.xlu0 %v623_v52 }
  0xec   :  { %v457_v25 = vpop.f32.mrb[0].mxu0 }
  0xed   :  { %v238_v26 = vmul.f32 10.0, %v457_v25  ;;  %v228_v27 = vpop.f32.mrb[1].mxu0 }
  0xee   :  { %v237_v28 = vmul.f32 10.0, %v228_v27 }
  0xef   :  { %v241_v29 = vmul.f32 1.442695, %v238_v26 }
  0xf0   :  { %v239_v30 = vmul.f32 1.442695, %v237_v28 }
  0xf1   :  { %487 = vpow2.f32 %v241_v29 }
  0xf2   :  { %489 = vpow2.f32 %v239_v30 }
  0xfb   :  { %v488_v40 = vpop.eup %487 }
  0xfc   :  { %v490_v41 = vpop.eup %489  ;;  %v358_v42 = vmul.f32 %v488_v40, %v340_v38  ;;  %v356_v56 = vmul.f32 %v488_v40, %v334_v18 }
  0xfd   :  { %v357_v43 = vmul.f32 %v490_v41, %v339_v39  ;;  %v355_v57 = vmul.f32 %v490_v41, %v333_v21 }
  0xfe   :  { %v360_v44 = vsel %vm341_vm2, %v358_v42, 0.0 }
  0xff   :  { %v359_v45 = vsel %vm341_vm2, %v357_v43, 0.0 }
 0x100   :  { %v361_v46 = vadd.f32 %v360_v44, %v359_v45 }
 0x102   :  { %v362_v47 = vrot.slane %v361_v46, 4 }
 0x104   :  { %v363_v48 = vadd.f32 %v362_v47, %v361_v46 }
 0x106   :  { %v364_v50 = vrot.slane %v363_v48, 2 }
 0x108   :  { %v365_v52 = vadd.f32 %v364_v50, %v363_v48 }
 0x10a   :  { %v366_v55 = vrot.slane %v365_v52, 1 }
 0x10c   :  { %v367_v58 = vadd.f32 %v366_v55, %v365_v52 }
 0x10e   :  { %v368_v60 = vadd.f32 %v367_v58, %v355_v57  ;;  %v369_v61 = vadd.f32 %v367_v58, %v356_v56 }
 0x110   :  { %491 = vrcp.f32 %v368_v60 }
 0x111   :  { %493 = vrcp.f32 %v369_v61 }
 0x116   :  { %s465_s18 = spop %464 }
 0x117   :  { %v91_v48 = vstv %s465_s18 }
 0x118   :  { %v92_v49 = vmax.f32 %v91_v48, 1.0 }
 0x11a   :  { %v492_v0 = vpop.eup %491 }
 0x11b   :  { %v494_v1 = vpop.eup %493  ;;  %v372_v2 = vmul.f32 %v492_v0, %v355_v57 }
 0x11c   :  { %v373_v3 = vmul.f32 %v494_v1, %v356_v56 }
 0x11d   :  { %v374_v4 = vadd.f32 %v372_v2, %v339_v39 }
 0x11e   :  { %v375_v5 = vadd.f32 %v373_v3, %v340_v38 }
 0x11f   :  { %v376_v6 = vadd.f32 %v663_v19, %v374_v4 }
 0x120   :  { %v377_v7 = vadd.f32 %v652_v16, %v375_v5 }
 0x121   :  { %v378_v8 = vadd.f32 %v437_v37, %v376_v6 }
 0x122   :  { %v379_v9 = vadd.f32 %v438_v35, %v377_v7 }
 0x123   :  { %495 = vlog2.f32 %v378_v8 }
 0x124   :  { %497 = vlog2.f32 %v379_v9 }
 0x125   :  { %499 = vrcp.f32 %v92_v49 }
 0x12d   :  { %v496_v10 = vpop.eup %495 }
 0x12e   :  { %v498_v11 = vpop.eup %497  ;;  %v381_v12 = vmul.f32 0.6931472, %v496_v10 }
 0x12f   :  { %v383_v13 = vmul.f32 0.6931472, %v498_v11  ;;  %v500_v55 = vpop.eup %499 }
 0x130   :  { %v384_v14 = vsel %vm341_vm2, %v381_v12, 0.0 }
 0x131   :  { %v385_v15 = vsel %vm341_vm2, %v383_v13, 0.0 }
 0x132   :  { %v386_v17 = vadd.f32 %v385_v15, %v384_v14 }
 0x13a   :  { %v136_v18 = vpop.permute.xlu0 %135 }
 0x13b   :  { %v139_v20 = vsel %vm138_vm14, %v136_v18, 0.0 }
 0x13c   :  { %140 = vadd.xlane.f32.xlu0 %v139_v20 }
 0x140   :  { %387 = vadd.xlane.f32.xlu0 %v386_v17 }
 0x16b   :  { %v346_v26 = vpop.xlane.xlu1 %345 }
 0x16c   :  { %v347_v27 = vrot.slane %v346_v26, 4 }
 0x16e   :  { %v348_v28 = vadd.f32 %v347_v27, %v346_v26 }
 0x170   :  { %v349_v29 = vrot.slane %v348_v28, 2 }
 0x172   :  { %v350_v34 = vadd.f32 %v349_v29, %v348_v28 }
 0x174   :  { %v96_v19 = vpop.xlane.xlu0 %95  ;;  %v351_v40 = vrot.slane %v350_v34, 1 }
 0x175   :  { %v97_v16 = vrot.slane %v96_v19, 4 }
 0x176   :  { %v352_v45 = vadd.f32 %v351_v40, %v350_v34 }
 0x177   :  { %v98_v21 = vadd.f32 %v97_v16, %v96_v19 }
 0x179   :  { %v99_v22 = vrot.slane %v98_v21, 2 }
 0x17b   :  { %v100_v23 = vadd.f32 %v99_v22, %v98_v21 }
 0x17d   :  { %v101_v24 = vrot.slane %v100_v23, 1 }
 0x17f   :  { %v102_v25 = vadd.f32 %v101_v24, %v100_v23 }
 0x181   :  { %466 = vpush %v102_v25 }
 0x1b2   :  { %s467_s19 = spop %466 }
 0x1b3   :  { %v104_v33 = vstv %s467_s19 }
 0x1b4   :  { %v106_v59 = vmul.f32 %v500_v55, %v104_v33 }
 0x1c9   :  { %v141_v30 = vpop.xlane.xlu0 %140 }
 0x1ca   :  { %v142_v31 = vrot.slane %v141_v30, 4 }
 0x1cc   :  { %v143_v32 = vadd.f32 %v142_v31, %v141_v30 }
 0x1cd   :  { %v388_v35 = vpop.xlane.xlu0 %387 }
 0x1ce   :  { %v144_v36 = vrot.slane %v143_v32, 2  ;;  %v389_v37 = vrot.slane %v388_v35, 4 }
 0x1d0   :  { %v390_v38 = vadd.f32 %v389_v37, %v388_v35  ;;  %v145_v39 = vadd.f32 %v144_v36, %v143_v32 }
 0x1d2   :  { %v391_v41 = vrot.slane %v390_v38, 2  ;;  %v146_v42 = vrot.slane %v145_v39, 1 }
 0x1d4   :  { %v392_v43 = vadd.f32 %v391_v41, %v390_v38  ;;  %v147_v44 = vadd.f32 %v146_v42, %v145_v39 }
 0x1d6   :  { %468 = vpush %v147_v44  ;;  %v393_v46 = vrot.slane %v392_v43, 1 }
 0x1d7   :  { %470 = vpush %v352_v45 }
 0x1d8   :  { %v394_v47 = vadd.f32 %v393_v46, %v392_v43 }
 0x1da   :  { %472 = vpush %v394_v47 }
 0x207   :  { %s469_s20 = spop %468 }
 0x208   :  { %s471_s21 = spop %470  ;;  %v149_v52 = vstv %s469_s20 }
 0x209   :  { %v354_v50 = vstv %s471_s21  ;;  %v150_v56 = vmul.f32 0.00029761906, %v149_v52 }
 0x20a   :  { %v398_v51 = vmax.f32 %v354_v50, 1.0  ;;  %vm401_vm0 = vcmp.eq.f32.partialorder %v354_v50, 0.0 }
 0x20b   :  { %s473_s22 = spop %472  ;;  %v403_v61 = vadd.f32 %v150_v56, %v106_v59 }
 0x20c   :  { %501 = vrcp.f32 %v398_v51  ;;  %v396_v54 = vstv %s473_s22 }
 0x20d   :  { %v397_v57 = vsub.f32 0.0, %v396_v54 }
 0x216   :  { %v502_v58 = vpop.eup %501 }
 0x217   :  { %v400_v60 = vmul.f32 %v502_v58, %v397_v57 }
 0x219   :  { %v402_v62 = vsel %vm401_vm0, 0.0, %v400_v60 }
 0x21a   :  { %v404_v63 = vadd.f32 %v403_v61, %v402_v62 }
 0x21c   :  { %v406_v0 = vsel %vm405_vm1, %v404_v63, 0.0 }
 0x21d   :  { %v408_v1 = vsel %vm407_vm5, %v106_v59, %v406_v0 }
 0x21e   :  { %v410_v2 = vsel %vm409_vm8, %v150_v56, %v408_v1 }
 0x21f   :  { %v412_v3 = vsel %vm411_vm10, %v402_v62, %v410_v2 }
 0x220   :  { %413 = vst [vmem:[#allocation5] sm:$0x1] %v412_v3 }
 0x221   :  { %526 = shalt.err (!%p523_p9)
}
 0x222   :  { %s527_s0 = scalar_lea.hbm %s711_s5, 16 }
 0x223   :  { %p528_p10 = scmp.ne.s32.totalorder %s711_s5, %s527_s0  ;;  %p531_p11 = scmp.lt.u32.totalorder %s527_s0, %s711_s5 }
 0x225   :  { %p533_p12 = pnand %p531_p11, %p528_p10 }
 0x227   :  { %536 = shalt.err (!%p533_p12)
}
 0x228   :  { %423 = dma.vmem_to_hbm [thread:$0]  %s421_s24, 16, %s711_s5, [#allocation3]  }
 0x229   :  { %539 = dma.done.wait [#allocation3], 16  }
 0x22a   :  { %540 = vsyncadd [#allocation3], 4294967280 }
 0x22b   :  { %427 = vsyncpa [#allocation3], 1 }
 0x22c   :  { %428 = vsyncpa [#allocation4], 1 }

</bundles_post_ra>
